<compile_context>
chip_gen: v7x
topology: tpu7x:2x2x1
jax: 0.10.0
libtpu: 0.0.40
codegen_flags: <defaults>
</compile_context>

<pallas_src>
import math

import jax
import jax.numpy as jnp
from jax.experimental import pallas as pl
from jax.experimental.pallas import tpu as pltpu

LANE = 128          # vreg lane width
SUBLANE = 8         # vreg sublane count (f32)


def _dbn_kernel(x_ref, o_ref):
    x = x_ref[...]
    # heaviside(sigmoid(x) - 0.5, values=0.0):
    #   > 0 -> 1.0,  == 0 -> 0.0 (values),  < 0 -> 0.0
    v = jax.nn.sigmoid(x) - jnp.asarray(0.5, dtype=x.dtype)
    o_ref[...] = jnp.where(v > 0, 1.0, 0.0).astype(o_ref.dtype)


def dbn_forward(x, *, max_block_rows=2048):
    """Hard binarization: heaviside(sigmoid(x) - 0.5, 0), elementwise."""
    orig_shape = x.shape
    dtype = x.dtype
    n = math.prod(orig_shape)
    if n == 0:
        return jnp.zeros(orig_shape, dtype)

    # Flatten to a lane-dense (rows, LANE) slab, rows a multiple of SUBLANE.
    rows_needed = pl.cdiv(n, LANE)
    rows_needed = max(SUBLANE, pl.cdiv(rows_needed, SUBLANE) * SUBLANE)
    block_rows = min(max_block_rows, rows_needed)            # multiple of 8
    rows = pl.cdiv(rows_needed, block_rows) * block_rows
    n_pad = rows * LANE

    xf = jnp.ravel(x)
    if n_pad > n:
        xf = jnp.pad(xf, (0, n_pad - n))
    x2 = xf.reshape(rows, LANE)

    grid = (rows // block_rows,)
    out2 = pl.pallas_call(
        _dbn_kernel,
        grid=grid,
        in_specs=[pl.BlockSpec((block_rows, LANE), lambda i: (i, 0))],
        out_specs=pl.BlockSpec((block_rows, LANE), lambda i: (i, 0)),
        out_shape=jax.ShapeDtypeStruct((rows, LANE), dtype),
        compiler_params=pltpu.CompilerParams(
            dimension_semantics=("parallel",)),
    )(x2)

    if n_pad > n:
        out = out2.reshape(-1)[:n].reshape(orig_shape)
    else:
        out = out2.reshape(orig_shape)
    return out


if __name__ == "__main__":
    key = jax.random.PRNGKey(0)
    x = jax.random.normal(key, (2, 4, 16, 16), jnp.float32)
    # include an exact-zero element to exercise the heaviside tie -> 0.0 path
    x = x.at[0, 0, 0, 0].set(0.0)

    y = dbn_forward(x)
    y = jax.block_until_ready(y)

    assert y.shape == x.shape, y.shape
    assert y.dtype == x.dtype
    # forward value is a hard 0/1 threshold
    assert bool(jnp.all((y == 0.0) | (y == 1.0)))
    # reference check against plain-JAX heaviside(sigmoid(x) - 0.5, 0)
    ref = jnp.where(jax.nn.sigmoid(x) - 0.5 > 0, 1.0, 0.0)
    assert bool(jnp.all(y == ref))
    assert y[0, 0, 0, 0] == 0.0  # tie case uses values = 0.0

    print("KERNEL_OK")
</pallas_src>

<mosaic_0001>
module attributes {stable_mosaic.version = 11 : i64} {
  func.func @_dbn_kernel(%arg0: i32, %arg1: memref<16x128xf32, #tpu.memory_space<vmem>>, %arg2: memref<16x128xf32, #tpu.memory_space<vmem>>) attributes {dimension_semantics = [#tpu.dimension_semantics<parallel>], iteration_bounds = array<i64: 1>, scalar_prefetch = 0 : i64, scratch_operands = 0 : i64, tpu.core_type = #tpu.core_type<tc>, window_params = [{transform_indices = @transform_0, window_bounds = array<i64: 16, 128>}, {transform_indices = @transform_1, window_bounds = array<i64: 16, 128>}]} {
    %c0 = arith.constant 0 : index
    %c0_0 = arith.constant 0 : index
    %0 = vector.load %arg1[%c0, %c0_0] : memref<16x128xf32, #tpu.memory_space<vmem>>, vector<16x128xf32>
    %1 = arith.negf %0 : vector<16x128xf32>
    %2 = math.exp %1 : vector<16x128xf32>
    %cst = arith.constant 1.000000e+00 : f32
    %3 = vector.broadcast %cst : f32 to vector<16x128xf32>
    %4 = arith.addf %3, %2 : vector<16x128xf32>
    %5 = arith.divf %3, %4 : vector<16x128xf32>
    %cst_1 = arith.constant 5.000000e-01 : f32
    %6 = vector.broadcast %cst_1 : f32 to vector<16x128xf32>
    %7 = arith.subf %5, %6 : vector<16x128xf32>
    %cst_2 = arith.constant 0.000000e+00 : f32
    %8 = vector.broadcast %cst_2 : f32 to vector<16x128xf32>
    %9 = arith.cmpf ogt, %7, %8 : vector<16x128xf32>
    %cst_3 = arith.constant 1.000000e+00 : f32
    %cst_4 = arith.constant 0.000000e+00 : f32
    %10 = vector.broadcast %cst_3 : f32 to vector<16x128xf32>
    %11 = vector.broadcast %cst_4 : f32 to vector<16x128xf32>
    %12 = arith.select %9, %10, %11 : vector<16x128xi1>, vector<16x128xf32>
    %c0_5 = arith.constant 0 : index
    %c0_6 = arith.constant 0 : index
    %13 = vector.load %arg2[%c0_5, %c0_6] : memref<16x128xf32, #tpu.memory_space<vmem>>, vector<16x128xf32>
    tpu.vector_store %arg2[%c0_5, %c0_6], %12 {strides = array<i32>} : memref<16x128xf32, #tpu.memory_space<vmem>>, vector<16x128xf32>,
    return
  }
  func.func @transform_0(%arg0: i32) -> (i32, i32) {
    %c0_i32 = arith.constant 0 : i32
    %c0_i32_0 = arith.constant 0 : i32
    return %arg0, %c0_i32 : i32, i32
  }
  func.func @transform_1(%arg0: i32) -> (i32, i32) {
    %c0_i32 = arith.constant 0 : i32
    %c0_i32_0 = arith.constant 0 : i32
    return %arg0, %c0_i32 : i32, i32
  }
}

</mosaic_0001>

<bundles_post_ra>
// kernel: tpu_custom_call.1
= control target key start
LH: loop header
LB: loop body
LE: loop exit
PB: predicated region body
PF: predicated region fallthrough
CT: control target
= control target key end

     0   :  { %6 = vsyncpa [#allocation3], 0  ;;  %s172_s0 = inlined_call_operand.hbm [shape: f32[16,128], index: 0, kind: input, shape index: {}]   ;;  %s173_s1 = inlined_call_operand.hbm [shape: f32[16,128], index: 1, kind: output, shape index: {}]  }
   0x1   :  { %7 = vsyncpa [#allocation4], 0  ;;  %s127_s6 = smov [#allocation2]   ;;  %s79_s10 = scalar_lea.hbm %s172_s0, 256 }
   0x2   :  { %s13_s7 = sshll.u32 %s127_s6, 4  ;;  %p80_p0 = scmp.ne.s32.totalorder %s172_s0, %s79_s10  ;;  %s14_s7 = int_to_ptr.vmem [resolvable:$true] %s13_s7 }
   0x3   :  { %p83_p1 = scmp.lt.u32.totalorder %s79_s10, %s172_s0 }
   0x5   :  { %p85_p2 = pnand %p83_p1, %p80_p0 }
   0x7   :  { %88 = shalt.err (!%p85_p2)
}
   0x8   :  { %s89_s15 = scalar_lea.vmem %s14_s7, 256  ;;  %p94_p4 = scmp.lt.s32.totalorder %s14_s7, %s14_s7 }
   0x9   :  { %p90_p3 = scmp.ne.s32.totalorder %s14_s7, %s89_s15  ;;  %p95_p5 = scmp.lt.s32.totalorder %s89_s15, %s89_s15 }
   0xb   :  { %p96_p6 = por %p95_p5, %p94_p4 }
   0xd   :  { %p97_p7 = pnand %p96_p6, %p90_p3 }
   0xf   :  { %100 = shalt.err (!%p97_p7)
}
  0x10   :  { %s128_s16 = smov 128   ;;  %s129_s17 = smov 8  }
  0x11   :  { %19 = dma.hbm_to_vmem [thread:$0]  %s172_s0, 256, %s14_s7, [#allocation3], %s128_s16, %s128_s16, %s129_s17  }
  0x12   :  { %123 = dma.done.wait [#allocation3], 256  }
  0x13   :  { %124 = vsyncadd [#allocation3], 4294967040  ;;  %v23_v0 = vld [vmem:[#allocation2] sm:$0xff]  ;;  %v24_v1 = vld [vmem:[#allocation2 + $0x8] sm:$0xff]  ;;  %s130_s20 = smov [#allocation5]   ;;  %v131_v12 = vmov 0.0  }
  0x14   :  { %v62_v2 = vmul.f32 -1.442695, %v23_v0  ;;  %v63_v3 = vmul.f32 -1.442695, %v24_v1  ;;  %s50_s21 = sshll.u32 %s130_s20, 4  ;;  %s51_s21 = int_to_ptr.vmem [resolvable:$true] %s50_s21 }
  0x15   :  { %s101_s0 = scalar_lea.vmem %s51_s21, 256  ;;  %p106_p9 = scmp.lt.s32.totalorder %s51_s21, %s51_s21 }
  0x16   :  { %71 = vpow2.f32 %v62_v2  ;;  %p102_p8 = scmp.ne.s32.totalorder %s51_s21, %s101_s0  ;;  %p107_p10 = scmp.lt.s32.totalorder %s101_s0, %s101_s0 }
  0x17   :  { %73 = vpow2.f32 %v63_v3 }
  0x18   :  { %p108_p11 = por %p107_p10, %p106_p9 }
  0x1a   :  { %p109_p12 = pnand %p108_p11, %p102_p8 }
  0x20   :  { %v72_v4 = vpop.eup %71 }
  0x21   :  { %v74_v5 = vpop.eup %73  ;;  %v31_v6 = vadd.f32 1.0, %v72_v4 }
  0x22   :  { %v32_v7 = vadd.f32 1.0, %v74_v5 }
  0x23   :  { %75 = vrcp.f32 %v31_v6 }
  0x24   :  { %77 = vrcp.f32 %v32_v7 }
  0x2d   :  { %v76_v8 = vpop.eup %75 }
  0x2e   :  { %v78_v9 = vpop.eup %77  ;;  %v64_v10 = vadd.f32 -0.5, %v76_v8 }
  0x2f   :  { %v65_v11 = vadd.f32 -0.5, %v78_v9 }
  0x30   :  { %vm39_vm0 = vcmp.gt.f32.partialorder %v64_v10, 0.0 }
  0x31   :  { %v41_v13 = vsel %vm39_vm0, 1.0, %v131_v12  ;;  %vm40_vm1 = vcmp.gt.f32.partialorder %v65_v11, 0.0 }
  0x32   :  { %43 = vst [vmem:[#allocation5] sm:$0xff] %v41_v13  ;;  %v42_v14 = vsel %vm40_vm1, 1.0, %v131_v12 }
  0x33   :  { %44 = vst [vmem:[#allocation5 + $0x8] sm:$0xff] %v42_v14 }
  0x34   :  { %112 = shalt.err (!%p109_p12)
}
  0x35   :  { %s113_s24 = scalar_lea.hbm %s173_s1, 256 }
  0x36   :  { %p114_p13 = scmp.ne.s32.totalorder %s173_s1, %s113_s24  ;;  %p117_p0 = scmp.lt.u32.totalorder %s113_s24, %s173_s1 }
  0x38   :  { %p119_p1 = pnand %p117_p0, %p114_p13 }
  0x3a   :  { %122 = shalt.err (!%p119_p1)
}
  0x3b   :  { %56 = dma.vmem_to_hbm [thread:$0]  %s51_s21, 256, %s173_s1, [#allocation4], %s128_s16, %s128_s16, %s129_s17  }
  0x3c   :  { %125 = dma.done.wait [#allocation4], 256  }
  0x3d   :  { %126 = vsyncadd [#allocation4], 4294967040 }
  0x3e   :  { %60 = vsyncpa [#allocation3], 1 }
  0x3f   :  { %61 = vsyncpa [#allocation4], 1 }

</bundles_post_ra>
